<compile_context>
chip_gen: v7x
topology: tpu7x:2x2x1
jax: 0.10.0
libtpu: 0.0.40
codegen_flags: <defaults>
</compile_context>

<pallas_src>
import functools

import jax
import jax.numpy as jnp
from jax import lax
from jax.experimental import pallas as pl
from jax.experimental.pallas import tpu as pltpu


SIGMA = 0.5


# ----------------------------------------------------------------------------
# Fused Pallas kernel
# ----------------------------------------------------------------------------
def _row_normalize(x):
    """x / sum(x, axis=1): approx EUP reciprocal + one Newton refinement."""
    s = jnp.sum(x, axis=1, keepdims=True)
    r = pl.reciprocal(s, approx=True)
    r = r * (2.0 - s * r)  # one Newton step -> near full f32 precision
    return x * r


def _sdcn_fused_kernel(
    # inputs
    x_ref, adj_ref,
    e1w_ref, e1b_ref, e2w_ref, e2b_ref, e3w_ref, e3b_ref, zw_ref, zb_ref,
    d1w_ref, d1b_ref, d2w_ref, d2b_ref, d3w_ref, d3b_ref, xw_ref, xb_ref,
    g1_ref, g2_ref, g3_ref, g4_ref, g5_ref, mu_ref,
    # outputs
    xbar_ref, q_ref, pred_ref, z_ref,
    *, v,
):
    relu = lambda t: jnp.maximum(t, 0.0)
    dot = lambda a, b: jnp.dot(a, b, preferred_element_type=jnp.float32)

    x = x_ref[...]
    adj = adj_ref[...]

    # --- AE encoder ---
    tra1 = relu(dot(x, e1w_ref[...]) + e1b_ref[...])
    tra2 = relu(dot(tra1, e2w_ref[...]) + e2b_ref[...])
    tra3 = relu(dot(tra2, e3w_ref[...]) + e3b_ref[...])
    z = dot(tra3, zw_ref[...]) + zb_ref[...]

    # --- AE decoder ---
    dec1 = relu(dot(z, d1w_ref[...]) + d1b_ref[...])
    dec2 = relu(dot(dec1, d2w_ref[...]) + d2b_ref[...])
    dec3 = relu(dot(dec2, d3w_ref[...]) + d3b_ref[...])
    x_bar = dot(dec3, xw_ref[...]) + xb_ref[...]

    # --- GCN branch with sigma mixing (blend fused on the VPU) ---
    one_m_s = 1.0 - SIGMA
    h = relu(dot(adj, dot(x, g1_ref[...])))
    h = relu(dot(adj, dot(one_m_s * h + SIGMA * tra1, g2_ref[...])))
    h = relu(dot(adj, dot(one_m_s * h + SIGMA * tra2, g3_ref[...])))
    h = relu(dot(adj, dot(one_m_s * h + SIGMA * tra3, g4_ref[...])))
    h = dot(adj, dot(one_m_s * h + SIGMA * z, g5_ref[...]))

    # --- row softmax (fused epilogue of gnn_5) ---
    m = jnp.max(h, axis=1, keepdims=True)
    e = jnp.exp(h - m)
    predict = _row_normalize(e)

    # --- Student-t soft assignment q ---
    # ||z_i - mu_k||^2 = ||z_i||^2 + ||mu_k||^2 - 2 z_i . mu_k
    mu = mu_ref[...]                                           # (K, n_z)
    n_z = mu.shape[1]
    z2 = jnp.sum(z * z, axis=1, keepdims=True)                 # (N, 1)
    mu_sq = mu * mu
    ones_row = jnp.ones((1, n_z), dtype=jnp.float32)
    mu2 = lax.dot_general(                                     # (1, K)
        ones_row, mu_sq,
        dimension_numbers=(((1,), (1,)), ((), ())),
        preferred_element_type=jnp.float32)
    cross = lax.dot_general(                                   # (N, K)
        z, mu,
        dimension_numbers=(((1,), (1,)), ((), ())),
        preferred_element_type=jnp.float32)
    dist = jnp.maximum(z2 + mu2 - 2.0 * cross, 0.0)            # clamp cancellation

    q = 1.0 / (1.0 + dist / v)
    power = (v + 1.0) / 2.0
    if power != 1.0:  # trace-time specialization; no-op for default v=1
        q = jnp.exp(power * jnp.log(q))
    q = _row_normalize(q)

    # --- stores ---
    xbar_ref[...] = x_bar
    q_ref[...] = q
    pred_ref[...] = predict
    z_ref[...] = z


# ----------------------------------------------------------------------------
# pallas_call wrapper
# ----------------------------------------------------------------------------
def _full_spec(shape):
    return pl.BlockSpec(shape, lambda: (0,) * len(shape))


def sdcn_forward(params, x, adj, v=1.0):
    n, n_input = x.shape
    n_z = params["z_layer"]["w"].shape[1]
    k = params["cluster_layer"].shape[0]

    args = (
        x, adj,
        params["enc_1"]["w"], params["enc_1"]["b"],
        params["enc_2"]["w"], params["enc_2"]["b"],
        params["enc_3"]["w"], params["enc_3"]["b"],
        params["z_layer"]["w"], params["z_layer"]["b"],
        params["dec_1"]["w"], params["dec_1"]["b"],
        params["dec_2"]["w"], params["dec_2"]["b"],
        params["dec_3"]["w"], params["dec_3"]["b"],
        params["x_bar_layer"]["w"], params["x_bar_layer"]["b"],
        params["gnn_1"], params["gnn_2"], params["gnn_3"],
        params["gnn_4"], params["gnn_5"],
        params["cluster_layer"],
    )

    out_shape = (
        jax.ShapeDtypeStruct((n, n_input), jnp.float32),  # x_bar
        jax.ShapeDtypeStruct((n, k), jnp.float32),        # q
        jax.ShapeDtypeStruct((n, k), jnp.float32),        # predict
        jax.ShapeDtypeStruct((n, n_z), jnp.float32),      # z
    )

    return pl.pallas_call(
        functools.partial(_sdcn_fused_kernel, v=float(v)),
        out_shape=out_shape,
        in_specs=[_full_spec(a.shape) for a in args],
        out_specs=tuple(_full_spec(s.shape) for s in out_shape),
        compiler_params=pltpu.CompilerParams(vmem_limit_bytes=32 * 1024 * 1024),
    )(*args)


# ----------------------------------------------------------------------------
# Parameter construction (deterministic, synthetic)
# ----------------------------------------------------------------------------
def init_params(key, dims):
    (n_enc_1, n_enc_2, n_enc_3, n_dec_1, n_dec_2, n_dec_3,
     n_input, n_z, n_clusters) = dims

    def lin(key, d_in, d_out):
        kw, kb = jax.random.split(key)
        scale = 1.0 / jnp.sqrt(jnp.float32(d_in))
        w = jax.random.uniform(kw, (d_in, d_out), jnp.float32, -scale, scale)
        b = jax.random.uniform(kb, (1, d_out), jnp.float32, -scale, scale)
        return {"w": w, "b": b}

    def gnn(key, d_in, d_out):
        scale = jnp.sqrt(6.0 / jnp.float32(d_in + d_out))  # xavier uniform
        return jax.random.uniform(key, (d_in, d_out), jnp.float32, -scale, scale)

    keys = jax.random.split(key, 16)
    return {
        # AE encoder
        "enc_1": lin(keys[0], n_input, n_enc_1),
        "enc_2": lin(keys[1], n_enc_1, n_enc_2),
        "enc_3": lin(keys[2], n_enc_2, n_enc_3),
        "z_layer": lin(keys[3], n_enc_3, n_z),
        # AE decoder
        "dec_1": lin(keys[4], n_z, n_dec_1),
        "dec_2": lin(keys[5], n_dec_1, n_dec_2),
        "dec_3": lin(keys[6], n_dec_2, n_dec_3),
        "x_bar_layer": lin(keys[7], n_dec_3, n_input),
        # GNN layers
        "gnn_1": gnn(keys[8], n_input, n_enc_1),
        "gnn_2": gnn(keys[9], n_enc_1, n_enc_2),
        "gnn_3": gnn(keys[10], n_enc_2, n_enc_3),
        "gnn_4": gnn(keys[11], n_enc_3, n_z),
        "gnn_5": gnn(keys[12], n_z, n_clusters),
        # cluster centers (xavier normal)
        "cluster_layer": jax.random.normal(keys[13], (n_clusters, n_z), jnp.float32)
        * jnp.sqrt(2.0 / jnp.float32(n_clusters + n_z)),
    }


# ----------------------------------------------------------------------------
# Pure-JAX reference (for correctness check)
# ----------------------------------------------------------------------------
def sdcn_forward_ref(params, x, adj, v=1.0):
    relu = lambda t: jnp.maximum(t, 0.0)
    lin = lambda t, p: t @ p["w"] + p["b"]
    tra1 = relu(lin(x, params["enc_1"]))
    tra2 = relu(lin(tra1, params["enc_2"]))
    tra3 = relu(lin(tra2, params["enc_3"]))
    z = lin(tra3, params["z_layer"])
    dec1 = relu(lin(z, params["dec_1"]))
    dec2 = relu(lin(dec1, params["dec_2"]))
    dec3 = relu(lin(dec2, params["dec_3"]))
    x_bar = lin(dec3, params["x_bar_layer"])

    gnn = lambda t, w: adj @ (t @ w)
    h = relu(gnn(x, params["gnn_1"]))
    h = relu(gnn((1 - SIGMA) * h + SIGMA * tra1, params["gnn_2"]))
    h = relu(gnn((1 - SIGMA) * h + SIGMA * tra2, params["gnn_3"]))
    h = relu(gnn((1 - SIGMA) * h + SIGMA * tra3, params["gnn_4"]))
    h = gnn((1 - SIGMA) * h + SIGMA * z, params["gnn_5"])
    predict = jax.nn.softmax(h, axis=1)

    mu = params["cluster_layer"]
    dist = jnp.sum((z[:, None, :] - mu[None, :, :]) ** 2, axis=2)
    q = 1.0 / (1.0 + dist / v)
    q = q ** ((v + 1.0) / 2.0)
    q = q / jnp.sum(q, axis=1, keepdims=True)
    return x_bar, q, predict, z


# ----------------------------------------------------------------------------
# Main
# ----------------------------------------------------------------------------
if __name__ == "__main__":
    # Small, self-consistent SDCN configuration.
    n_enc_1, n_enc_2, n_enc_3 = 64, 64, 32
    n_dec_1, n_dec_2, n_dec_3 = 32, 64, 64
    n_input, n_z, n_clusters = 32, 16, 4
    N = 8  # number of graph nodes / samples
    dims = (n_enc_1, n_enc_2, n_enc_3, n_dec_1, n_dec_2, n_dec_3,
            n_input, n_z, n_clusters)

    key = jax.random.PRNGKey(0)
    k_param, k_x, k_adj = jax.random.split(key, 3)

    params = init_params(k_param, dims)
    x = jax.random.normal(k_x, (N, n_input), jnp.float32)

    # Symmetric, row-normalized dense adjacency (with self-loops).
    a = jax.random.uniform(k_adj, (N, N), jnp.float32)
    a = (a + a.T) * 0.5 + jnp.eye(N, dtype=jnp.float32)
    adj = a / jnp.sum(a, axis=1, keepdims=True)

    x_bar, q, predict, z = sdcn_forward(params, x, adj, v=1.0)
    jax.block_until_ready((x_bar, q, predict, z))

    # Validate against the pure-JAX reference.
    x_bar_r, q_r, predict_r, z_r = sdcn_forward_ref(params, x, adj, v=1.0)
    assert jnp.allclose(x_bar, x_bar_r, atol=1e-4, rtol=1e-4)
    assert jnp.allclose(z, z_r, atol=1e-4, rtol=1e-4)
    assert jnp.allclose(q, q_r, atol=5e-4, rtol=5e-4)
    assert jnp.allclose(predict, predict_r, atol=5e-4, rtol=5e-4)

    print("KERNEL_OK")
</pallas_src>

<mosaic_0001>
module attributes {stable_mosaic.version = 11 : i64} {
  func.func @_sdcn_fused_kernel(%arg0: memref<8x32xf32, #tpu.memory_space<vmem>>, %arg1: memref<8x8xf32, #tpu.memory_space<vmem>>, %arg2: memref<32x64xf32, #tpu.memory_space<vmem>>, %arg3: memref<1x64xf32, #tpu.memory_space<vmem>>, %arg4: memref<64x64xf32, #tpu.memory_space<vmem>>, %arg5: memref<1x64xf32, #tpu.memory_space<vmem>>, %arg6: memref<64x32xf32, #tpu.memory_space<vmem>>, %arg7: memref<1x32xf32, #tpu.memory_space<vmem>>, %arg8: memref<32x16xf32, #tpu.memory_space<vmem>>, %arg9: memref<1x16xf32, #tpu.memory_space<vmem>>, %arg10: memref<16x32xf32, #tpu.memory_space<vmem>>, %arg11: memref<1x32xf32, #tpu.memory_space<vmem>>, %arg12: memref<32x64xf32, #tpu.memory_space<vmem>>, %arg13: memref<1x64xf32, #tpu.memory_space<vmem>>, %arg14: memref<64x64xf32, #tpu.memory_space<vmem>>, %arg15: memref<1x64xf32, #tpu.memory_space<vmem>>, %arg16: memref<64x32xf32, #tpu.memory_space<vmem>>, %arg17: memref<1x32xf32, #tpu.memory_space<vmem>>, %arg18: memref<32x64xf32, #tpu.memory_space<vmem>>, %arg19: memref<64x64xf32, #tpu.memory_space<vmem>>, %arg20: memref<64x32xf32, #tpu.memory_space<vmem>>, %arg21: memref<32x16xf32, #tpu.memory_space<vmem>>, %arg22: memref<16x4xf32, #tpu.memory_space<vmem>>, %arg23: memref<4x16xf32, #tpu.memory_space<vmem>>, %arg24: memref<8x32xf32, #tpu.memory_space<vmem>>, %arg25: memref<8x4xf32, #tpu.memory_space<vmem>>, %arg26: memref<8x4xf32, #tpu.memory_space<vmem>>, %arg27: memref<8x16xf32, #tpu.memory_space<vmem>>) attributes {dimension_semantics = [], scalar_prefetch = 0 : i64, scratch_operands = 0 : i64, tpu.core_type = #tpu.core_type<tc>} {
    %c0 = arith.constant 0 : index
    %c0_0 = arith.constant 0 : index
    %0 = vector.load %arg0[%c0, %c0_0] : memref<8x32xf32, #tpu.memory_space<vmem>>, vector<8x32xf32>
    %c0_1 = arith.constant 0 : index
    %c0_2 = arith.constant 0 : index
    %1 = vector.load %arg1[%c0_1, %c0_2] : memref<8x8xf32, #tpu.memory_space<vmem>>, vector<8x8xf32>
    %c0_3 = arith.constant 0 : index
    %c0_4 = arith.constant 0 : index
    %2 = vector.load %arg2[%c0_3, %c0_4] : memref<32x64xf32, #tpu.memory_space<vmem>>, vector<32x64xf32>
    %cst = arith.constant dense<0.000000e+00> : vector<8x64xf32>
    %3 = tpu.matmul %0, %2, %cst {dimension_numbers = #tpu.dot_dimension_numbers<[1], [0], [0], [1], [0, 0, 1, 1], [], []>} : vector<8x32xf32>, vector<32x64xf32>, vector<8x64xf32> -> vector<8x64xf32>
    %c0_5 = arith.constant 0 : index
    %c0_6 = arith.constant 0 : index
    %4 = vector.load %arg3[%c0_5, %c0_6] : memref<1x64xf32, #tpu.memory_space<vmem>>, vector<1x64xf32>
    %5 = vector.broadcast %4 : vector<1x64xf32> to vector<8x64xf32>
    %6 = arith.addf %3, %5 : vector<8x64xf32>
    %cst_7 = arith.constant 0.000000e+00 : f32
    %7 = vector.broadcast %cst_7 : f32 to vector<8x64xf32>
    %8 = arith.maximumf %6, %7 : vector<8x64xf32>
    %c0_8 = arith.constant 0 : index
    %c0_9 = arith.constant 0 : index
    %9 = vector.load %arg4[%c0_8, %c0_9] : memref<64x64xf32, #tpu.memory_space<vmem>>, vector<64x64xf32>
    %cst_10 = arith.constant dense<0.000000e+00> : vector<8x64xf32>
    %10 = tpu.matmul %8, %9, %cst_10 {dimension_numbers = #tpu.dot_dimension_numbers<[1], [0], [0], [1], [0, 0, 1, 1], [], []>} : vector<8x64xf32>, vector<64x64xf32>, vector<8x64xf32> -> vector<8x64xf32>
    %c0_11 = arith.constant 0 : index
    %c0_12 = arith.constant 0 : index
    %11 = vector.load %arg5[%c0_11, %c0_12] : memref<1x64xf32, #tpu.memory_space<vmem>>, vector<1x64xf32>
    %12 = vector.broadcast %11 : vector<1x64xf32> to vector<8x64xf32>
    %13 = arith.addf %10, %12 : vector<8x64xf32>
    %cst_13 = arith.constant 0.000000e+00 : f32
    %14 = vector.broadcast %cst_13 : f32 to vector<8x64xf32>
    %15 = arith.maximumf %13, %14 : vector<8x64xf32>
    %c0_14 = arith.constant 0 : index
    %c0_15 = arith.constant 0 : index
    %16 = vector.load %arg6[%c0_14, %c0_15] : memref<64x32xf32, #tpu.memory_space<vmem>>, vector<64x32xf32>
    %cst_16 = arith.constant dense<0.000000e+00> : vector<8x32xf32>
    %17 = tpu.matmul %15, %16, %cst_16 {dimension_numbers = #tpu.dot_dimension_numbers<[1], [0], [0], [1], [0, 0, 1, 1], [], []>} : vector<8x64xf32>, vector<64x32xf32>, vector<8x32xf32> -> vector<8x32xf32>
    %c0_17 = arith.constant 0 : index
    %c0_18 = arith.constant 0 : index
    %18 = vector.load %arg7[%c0_17, %c0_18] : memref<1x32xf32, #tpu.memory_space<vmem>>, vector<1x32xf32>
    %19 = vector.broadcast %18 : vector<1x32xf32> to vector<8x32xf32>
    %20 = arith.addf %17, %19 : vector<8x32xf32>
    %cst_19 = arith.constant 0.000000e+00 : f32
    %21 = vector.broadcast %cst_19 : f32 to vector<8x32xf32>
    %22 = arith.maximumf %20, %21 : vector<8x32xf32>
    %c0_20 = arith.constant 0 : index
    %c0_21 = arith.constant 0 : index
    %23 = vector.load %arg8[%c0_20, %c0_21] : memref<32x16xf32, #tpu.memory_space<vmem>>, vector<32x16xf32>
    %cst_22 = arith.constant dense<0.000000e+00> : vector<8x16xf32>
    %24 = tpu.matmul %22, %23, %cst_22 {dimension_numbers = #tpu.dot_dimension_numbers<[1], [0], [0], [1], [0, 0, 1, 1], [], []>} : vector<8x32xf32>, vector<32x16xf32>, vector<8x16xf32> -> vector<8x16xf32>
    %c0_23 = arith.constant 0 : index
    %c0_24 = arith.constant 0 : index
    %25 = vector.load %arg9[%c0_23, %c0_24] : memref<1x16xf32, #tpu.memory_space<vmem>>, vector<1x16xf32>
    %26 = vector.broadcast %25 : vector<1x16xf32> to vector<8x16xf32>
    %27 = arith.addf %24, %26 : vector<8x16xf32>
    %c0_25 = arith.constant 0 : index
    %c0_26 = arith.constant 0 : index
    %28 = vector.load %arg10[%c0_25, %c0_26] : memref<16x32xf32, #tpu.memory_space<vmem>>, vector<16x32xf32>
    %cst_27 = arith.constant dense<0.000000e+00> : vector<8x32xf32>
    %29 = tpu.matmul %27, %28, %cst_27 {dimension_numbers = #tpu.dot_dimension_numbers<[1], [0], [0], [1], [0, 0, 1, 1], [], []>} : vector<8x16xf32>, vector<16x32xf32>, vector<8x32xf32> -> vector<8x32xf32>
    %c0_28 = arith.constant 0 : index
    %c0_29 = arith.constant 0 : index
    %30 = vector.load %arg11[%c0_28, %c0_29] : memref<1x32xf32, #tpu.memory_space<vmem>>, vector<1x32xf32>
    %31 = vector.broadcast %30 : vector<1x32xf32> to vector<8x32xf32>
    %32 = arith.addf %29, %31 : vector<8x32xf32>
    %cst_30 = arith.constant 0.000000e+00 : f32
    %33 = vector.broadcast %cst_30 : f32 to vector<8x32xf32>
    %34 = arith.maximumf %32, %33 : vector<8x32xf32>
    %c0_31 = arith.constant 0 : index
    %c0_32 = arith.constant 0 : index
    %35 = vector.load %arg12[%c0_31, %c0_32] : memref<32x64xf32, #tpu.memory_space<vmem>>, vector<32x64xf32>
    %cst_33 = arith.constant dense<0.000000e+00> : vector<8x64xf32>
    %36 = tpu.matmul %34, %35, %cst_33 {dimension_numbers = #tpu.dot_dimension_numbers<[1], [0], [0], [1], [0, 0, 1, 1], [], []>} : vector<8x32xf32>, vector<32x64xf32>, vector<8x64xf32> -> vector<8x64xf32>
    %c0_34 = arith.constant 0 : index
    %c0_35 = arith.constant 0 : index
    %37 = vector.load %arg13[%c0_34, %c0_35] : memref<1x64xf32, #tpu.memory_space<vmem>>, vector<1x64xf32>
    %38 = vector.broadcast %37 : vector<1x64xf32> to vector<8x64xf32>
    %39 = arith.addf %36, %38 : vector<8x64xf32>
    %cst_36 = arith.constant 0.000000e+00 : f32
    %40 = vector.broadcast %cst_36 : f32 to vector<8x64xf32>
    %41 = arith.maximumf %39, %40 : vector<8x64xf32>
    %c0_37 = arith.constant 0 : index
    %c0_38 = arith.constant 0 : index
    %42 = vector.load %arg14[%c0_37, %c0_38] : memref<64x64xf32, #tpu.memory_space<vmem>>, vector<64x64xf32>
    %cst_39 = arith.constant dense<0.000000e+00> : vector<8x64xf32>
    %43 = tpu.matmul %41, %42, %cst_39 {dimension_numbers = #tpu.dot_dimension_numbers<[1], [0], [0], [1], [0, 0, 1, 1], [], []>} : vector<8x64xf32>, vector<64x64xf32>, vector<8x64xf32> -> vector<8x64xf32>
    %c0_40 = arith.constant 0 : index
    %c0_41 = arith.constant 0 : index
    %44 = vector.load %arg15[%c0_40, %c0_41] : memref<1x64xf32, #tpu.memory_space<vmem>>, vector<1x64xf32>
    %45 = vector.broadcast %44 : vector<1x64xf32> to vector<8x64xf32>
    %46 = arith.addf %43, %45 : vector<8x64xf32>
    %cst_42 = arith.constant 0.000000e+00 : f32
    %47 = vector.broadcast %cst_42 : f32 to vector<8x64xf32>
    %48 = arith.maximumf %46, %47 : vector<8x64xf32>
    %c0_43 = arith.constant 0 : index
    %c0_44 = arith.constant 0 : index
    %49 = vector.load %arg16[%c0_43, %c0_44] : memref<64x32xf32, #tpu.memory_space<vmem>>, vector<64x32xf32>
    %cst_45 = arith.constant dense<0.000000e+00> : vector<8x32xf32>
    %50 = tpu.matmul %48, %49, %cst_45 {dimension_numbers = #tpu.dot_dimension_numbers<[1], [0], [0], [1], [0, 0, 1, 1], [], []>} : vector<8x64xf32>, vector<64x32xf32>, vector<8x32xf32> -> vector<8x32xf32>
    %c0_46 = arith.constant 0 : index
    %c0_47 = arith.constant 0 : index
    %51 = vector.load %arg17[%c0_46, %c0_47] : memref<1x32xf32, #tpu.memory_space<vmem>>, vector<1x32xf32>
    %52 = vector.broadcast %51 : vector<1x32xf32> to vector<8x32xf32>
    %53 = arith.addf %50, %52 : vector<8x32xf32>
    %c0_48 = arith.constant 0 : index
    %c0_49 = arith.constant 0 : index
    %54 = vector.load %arg18[%c0_48, %c0_49] : memref<32x64xf32, #tpu.memory_space<vmem>>, vector<32x64xf32>
    %cst_50 = arith.constant dense<0.000000e+00> : vector<8x64xf32>
    %55 = tpu.matmul %0, %54, %cst_50 {dimension_numbers = #tpu.dot_dimension_numbers<[1], [0], [0], [1], [0, 0, 1, 1], [], []>} : vector<8x32xf32>, vector<32x64xf32>, vector<8x64xf32> -> vector<8x64xf32>
    %cst_51 = arith.constant dense<0.000000e+00> : vector<8x64xf32>
    %56 = tpu.matmul %1, %55, %cst_51 {dimension_numbers = #tpu.dot_dimension_numbers<[1], [0], [0], [1], [0, 0, 1, 1], [], []>} : vector<8x8xf32>, vector<8x64xf32>, vector<8x64xf32> -> vector<8x64xf32>
    %cst_52 = arith.constant 0.000000e+00 : f32
    %57 = vector.broadcast %cst_52 : f32 to vector<8x64xf32>
    %58 = arith.maximumf %56, %57 : vector<8x64xf32>
    %cst_53 = arith.constant 5.000000e-01 : f32
    %59 = vector.broadcast %cst_53 : f32 to vector<8x64xf32>
    %60 = arith.mulf %59, %58 : vector<8x64xf32>
    %cst_54 = arith.constant 5.000000e-01 : f32
    %61 = vector.broadcast %cst_54 : f32 to vector<8x64xf32>
    %62 = arith.mulf %61, %8 : vector<8x64xf32>
    %63 = arith.addf %60, %62 : vector<8x64xf32>
    %c0_55 = arith.constant 0 : index
    %c0_56 = arith.constant 0 : index
    %64 = vector.load %arg19[%c0_55, %c0_56] : memref<64x64xf32, #tpu.memory_space<vmem>>, vector<64x64xf32>
    %cst_57 = arith.constant dense<0.000000e+00> : vector<8x64xf32>
    %65 = tpu.matmul %63, %64, %cst_57 {dimension_numbers = #tpu.dot_dimension_numbers<[1], [0], [0], [1], [0, 0, 1, 1], [], []>} : vector<8x64xf32>, vector<64x64xf32>, vector<8x64xf32> -> vector<8x64xf32>
    %cst_58 = arith.constant dense<0.000000e+00> : vector<8x64xf32>
    %66 = tpu.matmul %1, %65, %cst_58 {dimension_numbers = #tpu.dot_dimension_numbers<[1], [0], [0], [1], [0, 0, 1, 1], [], []>} : vector<8x8xf32>, vector<8x64xf32>, vector<8x64xf32> -> vector<8x64xf32>
    %cst_59 = arith.constant 0.000000e+00 : f32
    %67 = vector.broadcast %cst_59 : f32 to vector<8x64xf32>
    %68 = arith.maximumf %66, %67 : vector<8x64xf32>
    %cst_60 = arith.constant 5.000000e-01 : f32
    %69 = vector.broadcast %cst_60 : f32 to vector<8x64xf32>
    %70 = arith.mulf %69, %68 : vector<8x64xf32>
    %cst_61 = arith.constant 5.000000e-01 : f32
    %71 = vector.broadcast %cst_61 : f32 to vector<8x64xf32>
    %72 = arith.mulf %71, %15 : vector<8x64xf32>
    %73 = arith.addf %70, %72 : vector<8x64xf32>
    %c0_62 = arith.constant 0 : index
    %c0_63 = arith.constant 0 : index
    %74 = vector.load %arg20[%c0_62, %c0_63] : memref<64x32xf32, #tpu.memory_space<vmem>>, vector<64x32xf32>
    %cst_64 = arith.constant dense<0.000000e+00> : vector<8x32xf32>
    %75 = tpu.matmul %73, %74, %cst_64 {dimension_numbers = #tpu.dot_dimension_numbers<[1], [0], [0], [1], [0, 0, 1, 1], [], []>} : vector<8x64xf32>, vector<64x32xf32>, vector<8x32xf32> -> vector<8x32xf32>
    %cst_65 = arith.constant dense<0.000000e+00> : vector<8x32xf32>
    %76 = tpu.matmul %1, %75, %cst_65 {dimension_numbers = #tpu.dot_dimension_numbers<[1], [0], [0], [1], [0, 0, 1, 1], [], []>} : vector<8x8xf32>, vector<8x32xf32>, vector<8x32xf32> -> vector<8x32xf32>
    %cst_66 = arith.constant 0.000000e+00 : f32
    %77 = vector.broadcast %cst_66 : f32 to vector<8x32xf32>
    %78 = arith.maximumf %76, %77 : vector<8x32xf32>
    %cst_67 = arith.constant 5.000000e-01 : f32
    %79 = vector.broadcast %cst_67 : f32 to vector<8x32xf32>
    %80 = arith.mulf %79, %78 : vector<8x32xf32>
    %cst_68 = arith.constant 5.000000e-01 : f32
    %81 = vector.broadcast %cst_68 : f32 to vector<8x32xf32>
    %82 = arith.mulf %81, %22 : vector<8x32xf32>
    %83 = arith.addf %80, %82 : vector<8x32xf32>
    %c0_69 = arith.constant 0 : index
    %c0_70 = arith.constant 0 : index
    %84 = vector.load %arg21[%c0_69, %c0_70] : memref<32x16xf32, #tpu.memory_space<vmem>>, vector<32x16xf32>
    %cst_71 = arith.constant dense<0.000000e+00> : vector<8x16xf32>
    %85 = tpu.matmul %83, %84, %cst_71 {dimension_numbers = #tpu.dot_dimension_numbers<[1], [0], [0], [1], [0, 0, 1, 1], [], []>} : vector<8x32xf32>, vector<32x16xf32>, vector<8x16xf32> -> vector<8x16xf32>
    %cst_72 = arith.constant dense<0.000000e+00> : vector<8x16xf32>
    %86 = tpu.matmul %1, %85, %cst_72 {dimension_numbers = #tpu.dot_dimension_numbers<[1], [0], [0], [1], [0, 0, 1, 1], [], []>} : vector<8x8xf32>, vector<8x16xf32>, vector<8x16xf32> -> vector<8x16xf32>
    %cst_73 = arith.constant 0.000000e+00 : f32
    %87 = vector.broadcast %cst_73 : f32 to vector<8x16xf32>
    %88 = arith.maximumf %86, %87 : vector<8x16xf32>
    %cst_74 = arith.constant 5.000000e-01 : f32
    %89 = vector.broadcast %cst_74 : f32 to vector<8x16xf32>
    %90 = arith.mulf %89, %88 : vector<8x16xf32>
    %cst_75 = arith.constant 5.000000e-01 : f32
    %91 = vector.broadcast %cst_75 : f32 to vector<8x16xf32>
    %92 = arith.mulf %91, %27 : vector<8x16xf32>
    %93 = arith.addf %90, %92 : vector<8x16xf32>
    %c0_76 = arith.constant 0 : index
    %c0_77 = arith.constant 0 : index
    %94 = vector.load %arg22[%c0_76, %c0_77] : memref<16x4xf32, #tpu.memory_space<vmem>>, vector<16x4xf32>
    %cst_78 = arith.constant dense<0.000000e+00> : vector<8x4xf32>
    %95 = tpu.matmul %93, %94, %cst_78 {dimension_numbers = #tpu.dot_dimension_numbers<[1], [0], [0], [1], [0, 0, 1, 1], [], []>} : vector<8x16xf32>, vector<16x4xf32>, vector<8x4xf32> -> vector<8x4xf32>
    %cst_79 = arith.constant dense<0.000000e+00> : vector<8x4xf32>
    %96 = tpu.matmul %1, %95, %cst_79 {dimension_numbers = #tpu.dot_dimension_numbers<[1], [0], [0], [1], [0, 0, 1, 1], [], []>} : vector<8x8xf32>, vector<8x4xf32>, vector<8x4xf32> -> vector<8x4xf32>
    %cst_80 = arith.constant dense<0xFF800000> : vector<8xf32>
    %97 = vector.multi_reduction <maximumf>, %96, %cst_80 [1] : vector<8x4xf32> to vector<8xf32>
    %98 = vector.shape_cast %97 : vector<8xf32> to vector<8x1xf32>
    %99 = vector.broadcast %98 : vector<8x1xf32> to vector<8x4xf32>
    %100 = arith.subf %96, %99 : vector<8x4xf32>
    %101 = math.exp %100 : vector<8x4xf32>
    %cst_81 = arith.constant dense<0.000000e+00> : vector<8xf32>
    %102 = vector.multi_reduction <add>, %101, %cst_81 [1] : vector<8x4xf32> to vector<8xf32>
    %103 = vector.shape_cast %102 : vector<8xf32> to vector<8x1xf32>
    %104 = tpu.reciprocal %103 {approx = true} : vector<8x1xf32> -> vector<8x1xf32>
    %105 = arith.mulf %103, %104 : vector<8x1xf32>
    %cst_82 = arith.constant 2.000000e+00 : f32
    %106 = vector.broadcast %cst_82 : f32 to vector<8x1xf32>
    %107 = arith.subf %106, %105 : vector<8x1xf32>
    %108 = arith.mulf %104, %107 : vector<8x1xf32>
    %109 = vector.broadcast %108 : vector<8x1xf32> to vector<8x4xf32>
    %110 = arith.mulf %101, %109 : vector<8x4xf32>
    %c0_83 = arith.constant 0 : index
    %c0_84 = arith.constant 0 : index
    %111 = vector.load %arg23[%c0_83, %c0_84] : memref<4x16xf32, #tpu.memory_space<vmem>>, vector<4x16xf32>
    %112 = arith.mulf %27, %27 : vector<8x16xf32>
    %cst_85 = arith.constant dense<0.000000e+00> : vector<8xf32>
    %113 = vector.multi_reduction <add>, %112, %cst_85 [1] : vector<8x16xf32> to vector<8xf32>
    %114 = vector.shape_cast %113 : vector<8xf32> to vector<8x1xf32>
    %115 = arith.mulf %111, %111 : vector<4x16xf32>
    %cst_86 = arith.constant 1.000000e+00 : f32
    %116 = vector.broadcast %cst_86 : f32 to vector<1x16xf32>
    %cst_87 = arith.constant dense<0.000000e+00> : vector<1x4xf32>
    %117 = tpu.matmul %116, %115, %cst_87 {dimension_numbers = #tpu.dot_dimension_numbers<[1], [1], [0], [0], [0, 0, 1, 0], [], []>} : vector<1x16xf32>, vector<4x16xf32>, vector<1x4xf32> -> vector<1x4xf32>
    %cst_88 = arith.constant dense<0.000000e+00> : vector<8x4xf32>
    %118 = tpu.matmul %27, %111, %cst_88 {dimension_numbers = #tpu.dot_dimension_numbers<[1], [1], [0], [0], [0, 0, 1, 0], [], []>} : vector<8x16xf32>, vector<4x16xf32>, vector<8x4xf32> -> vector<8x4xf32>
    %119 = vector.broadcast %114 : vector<8x1xf32> to vector<8x4xf32>
    %120 = vector.broadcast %117 : vector<1x4xf32> to vector<8x4xf32>
    %121 = arith.addf %119, %120 : vector<8x4xf32>
    %cst_89 = arith.constant 2.000000e+00 : f32
    %122 = vector.broadcast %cst_89 : f32 to vector<8x4xf32>
    %123 = arith.mulf %122, %118 : vector<8x4xf32>
    %124 = arith.subf %121, %123 : vector<8x4xf32>
    %cst_90 = arith.constant 0.000000e+00 : f32
    %125 = vector.broadcast %cst_90 : f32 to vector<8x4xf32>
    %126 = arith.maximumf %124, %125 : vector<8x4xf32>
    %cst_91 = arith.constant 1.000000e+00 : f32
    %127 = vector.broadcast %cst_91 : f32 to vector<8x4xf32>
    %128 = arith.divf %126, %127 : vector<8x4xf32>
    %cst_92 = arith.constant 1.000000e+00 : f32
    %129 = vector.broadcast %cst_92 : f32 to vector<8x4xf32>
    %130 = arith.addf %129, %128 : vector<8x4xf32>
    %cst_93 = arith.constant 1.000000e+00 : f32
    %131 = vector.broadcast %cst_93 : f32 to vector<8x4xf32>
    %132 = arith.divf %131, %130 : vector<8x4xf32>
    %cst_94 = arith.constant dense<0.000000e+00> : vector<8xf32>
    %133 = vector.multi_reduction <add>, %132, %cst_94 [1] : vector<8x4xf32> to vector<8xf32>
    %134 = vector.shape_cast %133 : vector<8xf32> to vector<8x1xf32>
    %135 = tpu.reciprocal %134 {approx = true} : vector<8x1xf32> -> vector<8x1xf32>
    %136 = arith.mulf %134, %135 : vector<8x1xf32>
    %cst_95 = arith.constant 2.000000e+00 : f32
    %137 = vector.broadcast %cst_95 : f32 to vector<8x1xf32>
    %138 = arith.subf %137, %136 : vector<8x1xf32>
    %139 = arith.mulf %135, %138 : vector<8x1xf32>
    %140 = vector.broadcast %139 : vector<8x1xf32> to vector<8x4xf32>
    %141 = arith.mulf %132, %140 : vector<8x4xf32>
    %c0_96 = arith.constant 0 : index
    %c0_97 = arith.constant 0 : index
    %142 = vector.load %arg24[%c0_96, %c0_97] : memref<8x32xf32, #tpu.memory_space<vmem>>, vector<8x32xf32>
    tpu.vector_store %arg24[%c0_96, %c0_97], %53 {strides = array<i32>} : memref<8x32xf32, #tpu.memory_space<vmem>>, vector<8x32xf32>,
    %c0_98 = arith.constant 0 : index
    %c0_99 = arith.constant 0 : index
    %143 = vector.load %arg25[%c0_98, %c0_99] : memref<8x4xf32, #tpu.memory_space<vmem>>, vector<8x4xf32>
    tpu.vector_store %arg25[%c0_98, %c0_99], %141 {strides = array<i32>} : memref<8x4xf32, #tpu.memory_space<vmem>>, vector<8x4xf32>,
    %c0_100 = arith.constant 0 : index
    %c0_101 = arith.constant 0 : index
    %144 = vector.load %arg26[%c0_100, %c0_101] : memref<8x4xf32, #tpu.memory_space<vmem>>, vector<8x4xf32>
    tpu.vector_store %arg26[%c0_100, %c0_101], %110 {strides = array<i32>} : memref<8x4xf32, #tpu.memory_space<vmem>>, vector<8x4xf32>,
    %c0_102 = arith.constant 0 : index
    %c0_103 = arith.constant 0 : index
    %145 = vector.load %arg27[%c0_102, %c0_103] : memref<8x16xf32, #tpu.memory_space<vmem>>, vector<8x16xf32>
    tpu.vector_store %arg27[%c0_102, %c0_103], %27 {strides = array<i32>} : memref<8x16xf32, #tpu.memory_space<vmem>>, vector<8x16xf32>,
    return
  }
}

</mosaic_0001>

<bundles_post_ra>
// kernel: tpu_custom_call.1
= control target key start
LH: loop header
LB: loop body
LE: loop exit
PB: predicated region body
PF: predicated region fallthrough
CT: control target
= control target key end

     0   :  { %s3142_s0 = inlined_call_operand.hbm [shape: f32[8,32], index: 0, kind: input, shape index: {}]   ;;  %s3143_s1 = inlined_call_operand.hbm [shape: f32[8,8], index: 1, kind: input, shape index: {}]   ;;  %s3144_s2 = inlined_call_operand.vmem [shape: f32[32,64], index: 2, kind: input, shape index: {}]   ;;  %s3145_s3 = inlined_call_operand.vmem [shape: f32[1,64], index: 3, kind: input, shape index: {}]   ;;  %s3146_s4 = inlined_call_operand.vmem [shape: f32[64,64], index: 4, kind: input, shape index: {}]   ;;  %s3147_s5 = inlined_call_operand.hbm [shape: f32[1,64], index: 5, kind: input, shape index: {}]   ;;  %s3148_s6 = inlined_call_operand.vmem [shape: f32[64,32], index: 6, kind: input, shape index: {}]   ;;  %s3149_s7 = inlined_call_operand.hbm [shape: f32[1,32], index: 7, kind: input, shape index: {}]   ;;  %s3150_s8 = inlined_call_operand.vmem [shape: f32[32,16], index: 8, kind: input, shape index: {}]   ;;  %s3151_s9 = inlined_call_operand.hbm [shape: f32[1,16], index: 9, kind: input, shape index: {}]   ;;  %s3152_s10 = inlined_call_operand.vmem [shape: f32[16,32], index: 10, kind: input, shape index: {}]   ;;  %s3153_s11 = inlined_call_operand.hbm [shape: f32[1,32], index: 11, kind: input, shape index: {}]   ;;  %s3154_s12 = inlined_call_operand.vmem [shape: f32[32,64], index: 12, kind: input, shape index: {}]   ;;  %s3155_s13 = inlined_call_operand.vmem [shape: f32[1,64], index: 13, kind: input, shape index: {}]   ;;  %s3156_s14 = inlined_call_operand.vmem [shape: f32[64,64], index: 14, kind: input, shape index: {}]   ;;  %s3157_s15 = inlined_call_operand.vmem [shape: f32[1,64], index: 15, kind: input, shape index: {}]   ;;  %s3158_s16 = inlined_call_operand.vmem [shape: f32[64,32], index: 16, kind: input, shape index: {}]   ;;  %s3159_s17 = inlined_call_operand.vmem [shape: f32[1,32], index: 17, kind: input, shape index: {}]   ;;  %s3160_s18 = inlined_call_operand.vmem [shape: f32[32,64], index: 18, kind: input, shape index: {}]   ;;  %s3161_s19 = inlined_call_operand.vmem [shape: f32[64,64], index: 19, kind: input, shape index: {}]   ;;  %s3162_s20 = inlined_call_operand.vmem [shape: f32[64,32], index: 20, kind: input, shape index: {}]   ;;  %s3163_s21 = inlined_call_operand.vmem [shape: f32[32,16], index: 21, kind: input, shape index: {}]   ;;  %s3164_s22 = inlined_call_operand.vmem [shape: f32[16,4], index: 22, kind: input, shape index: {}]   ;;  %s3165_s23 = inlined_call_operand.vmem [shape: f32[4,16], index: 23, kind: input, shape index: {}]   ;;  %s3166_s24 = inlined_call_operand.hbm [shape: f32[8,32], index: 24, kind: output, shape index: {0}]   ;;  %s3167_s25 = inlined_call_operand.vmem [shape: f32[8,4], index: 25, kind: output, shape index: {1}]   ;;  %s3168_s26 = inlined_call_operand.vmem [shape: f32[8,4], index: 26, kind: output, shape index: {2}]   ;;  %s3169_s27 = inlined_call_operand.hbm [shape: f32[8,16], index: 27, kind: output, shape index: {3}]  }
   0x1   :  { %3181 = sst [smem:[#allocation22_spill]] %s3142_s0 }
   0x2   :  { %3182 = sst [smem:[#allocation23_spill]] %s3143_s1 }
   0x3   :  { %3183 = sst [smem:[#allocation24_spill]] %s3144_s2 }
   0x4   :  { %3184 = sst [smem:[#allocation25_spill]] %s3145_s3 }
   0x5   :  { %3185 = sst [smem:[#allocation26_spill]] %s3146_s4 }
   0x6   :  { %3186 = sst [smem:[#allocation27_spill]] %s3147_s5 }
   0x7   :  { %3187 = sst [smem:[#allocation28_spill]] %s3148_s6 }
   0x8   :  { %3188 = sst [smem:[#allocation29_spill]] %s3149_s7 }
   0x9   :  { %3189 = sst [smem:[#allocation30_spill]] %s3150_s8 }
   0xa   :  { %3190 = sst [smem:[#allocation31_spill]] %s3151_s9 }
   0xb   :  { %3191 = sst [smem:[#allocation32_spill]] %s3152_s10 }
   0xc   :  { %3192 = sst [smem:[#allocation33_spill]] %s3153_s11 }
   0xd   :  { %3193 = sst [smem:[#allocation34_spill]] %s3167_s25 }
   0xe   :  { %33 = vsyncpa [#allocation3], 0 }
   0xf   :  { %34 = vsyncpa [#allocation6], 0 }
  0x10   :  { %35 = vsyncpa [#allocation9], 0 }
  0x11   :  { %36 = vsyncpa [#allocation12], 0 }
  0x12   :  { %37 = vsyncpa [#allocation4], 0 }
  0x13   :  { %38 = vsyncpa [#allocation15], 0  ;;  %s2504_s7 = smov [#allocation5]   ;;  %s2505_s8 = smov [#allocation8]  }
  0x14   :  { %s55_s4 = sshll.u32 %s2504_s7, 4  ;;  %s83_s30 = sshll.u32 %s2505_s8, 4  ;;  %s56_s4 = int_to_ptr.vmem [resolvable:$true] %s55_s4  ;;  %s84_s30 = int_to_ptr.vmem [resolvable:$true] %s83_s30 }
  0x15   :  { %s3194_s28 = sld [smem:[#allocation23_spill]] }
  0x1b   :  { %s2316_s0 = scalar_lea.hbm %s3194_s28, 128 }
  0x1c   :  { %p2317_p0 = scmp.ne.s32.totalorder %s3194_s28, %s2316_s0  ;;  %p2320_p1 = scmp.lt.u32.totalorder %s2316_s0, %s3194_s28 }
  0x1e   :  { %p2322_p2 = pnand %p2320_p1, %p2317_p0 }
  0x20   :  { %2325 = shalt.err (!%p2322_p2)
}
  0x21   :  { %s2326_s11 = scalar_lea.vmem %s56_s4, 128  ;;  %p2331_p4 = scmp.lt.s32.totalorder %s56_s4, %s56_s4 }
  0x22   :  { %p2327_p3 = scmp.ne.s32.totalorder %s56_s4, %s2326_s11  ;;  %p2332_p5 = scmp.lt.s32.totalorder %s2326_s11, %s2326_s11 }
  0x24   :  { %p2333_p6 = por %p2332_p5, %p2331_p4 }
  0x26   :  { %p2334_p7 = pnand %p2333_p6, %p2327_p3 }
  0x28   :  { %2337 = shalt.err (!%p2334_p7)
}
  0x29   :  { %58 = dma.hbm_to_vmem [thread:$0]  %s3194_s28, 128, %s56_s4, [#allocation6]  }
  0x2a   :  { %s3195_s9 = sld [smem:[#allocation29_spill]] }
  0x30   :  { %s2338_s5 = scalar_lea.hbm %s3195_s9, 16 }
  0x31   :  { %p2339_p8 = scmp.ne.s32.totalorder %s3195_s9, %s2338_s5  ;;  %p2342_p9 = scmp.lt.u32.totalorder %s2338_s5, %s3195_s9 }
  0x33   :  { %p2344_p10 = pnand %p2342_p9, %p2339_p8 }
  0x35   :  { %2347 = shalt.err (!%p2344_p10)
}
  0x36   :  { %s2348_s6 = scalar_lea.vmem %s84_s30, 16  ;;  %s2352_s11 = scalar_lea.vmem %s84_s30, 32 }
  0x37   :  { %p2349_p11 = scmp.ne.s32.totalorder %s84_s30, %s2348_s6  ;;  %p2353_p12 = scmp.lt.s32.totalorder %s84_s30, %s84_s30 }
  0x38   :  { %p2354_p13 = scmp.lt.s32.totalorder %s2352_s11, %s2348_s6 }
  0x3a   :  { %p2355_p0 = por %p2354_p13, %p2353_p12 }
  0x3c   :  { %p2356_p1 = pnand %p2355_p0, %p2349_p11 }
  0x3e   :  { %2359 = shalt.err (!%p2356_p1)
}
  0x3f   :  { %86 = dma.hbm_to_vmem [thread:$0]  %s3195_s9, 16, %s84_s30, [#allocation9]  }
  0x40   :  { %s2506_s2 = smov [#allocation2]   ;;  %s2507_s7 = smov [#allocation7]  }
  0x41   :  { %s45_s3 = sshll.u32 %s2506_s2, 4  ;;  %s71_s8 = sshll.u32 %s2507_s7, 4  ;;  %s46_s3 = int_to_ptr.vmem [resolvable:$true] %s45_s3  ;;  %s72_s8 = int_to_ptr.vmem [resolvable:$true] %s71_s8 }
  0x42   :  { %s3196_s29 = sld [smem:[#allocation22_spill]] }
  0x48   :  { %s2360_s0 = scalar_lea.hbm %s3196_s29, 128 }
  0x49   :  { %p2361_p2 = scmp.ne.s32.totalorder %s3196_s29, %s2360_s0  ;;  %p2364_p3 = scmp.lt.u32.totalorder %s2360_s0, %s3196_s29 }
  0x4b   :  { %p2366_p4 = pnand %p2364_p3, %p2361_p2 }
  0x4d   :  { %2369 = shalt.err (!%p2366_p4)
}
  0x4e   :  { %s2370_s30 = scalar_lea.vmem %s46_s3, 128  ;;  %p2375_p6 = scmp.lt.s32.totalorder %s46_s3, %s46_s3 }
  0x4f   :  { %p2371_p5 = scmp.ne.s32.totalorder %s46_s3, %s2370_s30  ;;  %p2376_p7 = scmp.lt.s32.totalorder %s2370_s30, %s2370_s30 }
  0x51   :  { %p2377_p8 = por %p2376_p7, %p2375_p6 }
  0x53   :  { %p2378_p9 = pnand %p2377_p8, %p2371_p5 }
  0x55   :  { %2381 = shalt.err (!%p2378_p9)
}
  0x56   :  { %48 = dma.hbm_to_vmem [thread:$0]  %s3196_s29, 128, %s46_s3, [#allocation3]  }
  0x57   :  { %s3197_s2 = sld [smem:[#allocation27_spill]] }
  0x5d   :  { %s2382_s7 = scalar_lea.hbm %s3197_s2, 16 }
  0x5e   :  { %p2383_p10 = scmp.ne.s32.totalorder %s3197_s2, %s2382_s7  ;;  %p2386_p11 = scmp.lt.u32.totalorder %s2382_s7, %s3197_s2 }
  0x60   :  { %p2388_p12 = pnand %p2386_p11, %p2383_p10 }
  0x62   :  { %2391 = shalt.err (!%p2388_p12)
}
  0x63   :  { %s2392_s6 = scalar_lea.vmem %s72_s8, 16  ;;  %s2396_s11 = scalar_lea.vmem %s72_s8, 32 }
  0x64   :  { %p2393_p13 = scmp.ne.s32.totalorder %s72_s8, %s2392_s6  ;;  %p2397_p0 = scmp.lt.s32.totalorder %s72_s8, %s72_s8 }
  0x65   :  { %p2398_p1 = scmp.lt.s32.totalorder %s2396_s11, %s2392_s6 }
  0x67   :  { %p2399_p2 = por %p2398_p1, %p2397_p0 }
  0x69   :  { %p2400_p3 = pnand %p2399_p2, %p2393_p13 }
  0x6b   :  { %2403 = shalt.err (!%p2400_p3)
}
  0x6c   :  { %74 = dma.hbm_to_vmem [thread:$0]  %s3197_s2, 16, %s72_s8, [#allocation6]  }
  0x6d   :  { %s2508_s30 = smov [#allocation10]   ;;  %s2509_s4 = smov [#allocation11]  }
  0x6e   :  { %s95_s9 = sshll.u32 %s2508_s30, 4  ;;  %s107_s28 = sshll.u32 %s2509_s4, 4  ;;  %s96_s9 = int_to_ptr.vmem [resolvable:$true] %s95_s9  ;;  %s108_s28 = int_to_ptr.vmem [resolvable:$true] %s107_s28 }
  0x6f   :  { %s3198_s5 = sld [smem:[#allocation31_spill]] }
  0x75   :  { %s2404_s10 = scalar_lea.hbm %s3198_s5, 16 }
  0x76   :  { %p2405_p4 = scmp.ne.s32.totalorder %s3198_s5, %s2404_s10  ;;  %p2408_p5 = scmp.lt.u32.totalorder %s2404_s10, %s3198_s5 }
  0x78   :  { %p2410_p6 = pnand %p2408_p5, %p2405_p4 }
  0x7a   :  { %2413 = shalt.err (!%p2410_p6)
}
  0x7b   :  { %s2414_s8 = scalar_lea.vmem %s96_s9, 16  ;;  %s2418_s2 = scalar_lea.vmem %s96_s9, 32 }
  0x7c   :  { %p2415_p7 = scmp.ne.s32.totalorder %s96_s9, %s2414_s8  ;;  %p2419_p8 = scmp.lt.s32.totalorder %s96_s9, %s96_s9 }
  0x7d   :  { %p2420_p9 = scmp.lt.s32.totalorder %s2418_s2, %s2414_s8 }
  0x7f   :  { %p2421_p10 = por %p2420_p9, %p2419_p8 }
  0x81   :  { %p2422_p11 = pnand %p2421_p10, %p2415_p7 }
  0x83   :  { %2425 = shalt.err (!%p2422_p11)
}
  0x84   :  { %98 = dma.hbm_to_vmem [thread:$0]  %s3198_s5, 16, %s96_s9, [#allocation9]  }
  0x85   :  { %s3199_s25 = sld [smem:[#allocation33_spill]] }
  0x8b   :  { %s2426_s7 = scalar_lea.hbm %s3199_s25, 16 }
  0x8c   :  { %p2427_p12 = scmp.ne.s32.totalorder %s3199_s25, %s2426_s7  ;;  %p2430_p13 = scmp.lt.u32.totalorder %s2426_s7, %s3199_s25 }
  0x8e   :  { %p2432_p0 = pnand %p2430_p13, %p2427_p12 }
  0x90   :  { %2435 = shalt.err (!%p2432_p0)
}
  0x91   :  { %s2436_s11 = scalar_lea.vmem %s108_s28, 16  ;;  %s2440_s8 = scalar_lea.vmem %s108_s28, 32 }
  0x92   :  { %p2437_p1 = scmp.ne.s32.totalorder %s108_s28, %s2436_s11  ;;  %p2441_p2 = scmp.lt.s32.totalorder %s108_s28, %s108_s28 }
  0x93   :  { %p2442_p3 = scmp.lt.s32.totalorder %s2440_s8, %s2436_s11 }
  0x95   :  { %p2443_p4 = por %p2442_p3, %p2441_p2 }
  0x97   :  { %p2444_p5 = pnand %p2443_p4, %p2437_p1 }
  0x99   :  { %2447 = shalt.err (!%p2444_p5)
}
  0x9a   :  { %110 = dma.hbm_to_vmem [thread:$0]  %s3199_s25, 16, %s108_s28, [#allocation12]  }
  0x9b   :  { %2492 = dma.done.wait [#allocation3], 128  }
  0x9c   :  { %2493 = vsyncadd [#allocation3], 4294967168 }
  0x9d   :  { %2494 = dma.done.wait [#allocation6], 144  }
  0x9e   :  { %2495 = vsyncadd [#allocation6], 4294967152 }
  0x9f   :  { %2496 = dma.done.wait [#allocation9], 32  }
  0xa0   :  { %2497 = vsyncadd [#allocation9], 4294967264 }
  0xa1   :  { %2498 = dma.done.wait [#allocation12], 16  }
  0xa2   :  { %2499 = vsyncadd [#allocation12], 4294967280  ;;  %v2510_v0 = vmov 0.0|0.0   ;;  %vm2511_vm0 = vmmov 0   ;;  %v2512_v1 = vmov 0.0   ;;  %s3200_s3 = sld [smem:[#allocation24_spill]] }
  0xa3   :  { %2188 = vmatprep.subr.bf16.mxu0 %v2510_v0  ;;  %1978 = vmatprep.mubr.msk.f32.mxu0 %vm2511_vm0, %v2512_v1  ;;  %s3201_s6 = sld [smem:[#allocation26_spill]]  ;;  %v2766_v16 = vld [vmem:[#allocation2] sm:$0xff]  ;;  %vm166_vm1 = vcmask 261120   ;;  %s3202_s8 = sld [smem:[#allocation28_spill]]  ;;  %vm256_vm2 = vcmask 523264   ;;  %vm513_vm3 = vcmask 130048  }
  0xa4   :  { %2194 = vmatprep.subr.bf16.mxu1 %v2510_v0  ;;  %1997 = vmatprep.mubr.msk.f32.mxu1 %vm2511_vm0, %v2512_v1  ;;  %s3203_s10 = sld [smem:[#allocation25_spill]]  ;;  %v1843_v41 = vld [vmem:[#allocation7] ss:$0 sm:$0xff]  ;;  %v1845_v49 = vld [vmem:[#allocation8] ss:$0 sm:$0xff]  ;;  %v588_v63 = vld [vmem:[%s3154_s12] sm:$0xff] }
  0xa5   :  { %v1847_v57 = vld [vmem:[#allocation10] ss:$0 sm:$0xff]  ;;  %vm924_vm4 = vcmask 64512   ;;  %vm1608_vm5 = vcmask 31744  }
  0xa8   :  { %v155_v2 = vld [vmem:[%s3200_s3] sm:$0xff]  ;;  %v156_v3 = vld [vmem:[%s3200_s3 + $0x8] sm:$0xff]  ;;  %v157_v4 = vld [vmem:[%s3200_s3 + $0x10] sm:$0xff] }
  0xa9   :  { %v2189_v5 = vpack.c.bf16 %v156_v3, %v155_v2  ;;  %v158_v6 = vld [vmem:[%s3200_s3 + $0x18] sm:$0xff]  ;;  %v241_v7 = vld [vmem:[%s3201_s6] sm:$0xff]  ;;  %v242_v8 = vld [vmem:[%s3201_s6 + $0x8] sm:$0xff]  ;;  %s3204_s3 = sld [smem:[#allocation30_spill]] }
  0xaa   :  { %v243_v9 = vld [vmem:[%s3201_s6 + $0x10] sm:$0xff]  ;;  %v244_v10 = vld [vmem:[%s3201_s6 + $0x18] sm:$0xff]  ;;  %v2192_v11 = vpack.c.bf16 %v158_v6, %v157_v4  ;;  %v2195_v12 = vpack.c.bf16 %v242_v8, %v241_v7  ;;  %v245_v14 = vld [vmem:[%s3201_s6 + $0x20] sm:$0xff] }
  0xab   :  { %2190 = vmatpush3.bf16.msra.mxu0 %v2189_v5  ;;  %v2198_v13 = vpack.c.bf16 %v244_v10, %v243_v9  ;;  %v246_v15 = vld [vmem:[%s3201_s6 + $0x28] sm:$0xff]  ;;  %v247_v18 = vld [vmem:[%s3201_s6 + $0x30] sm:$0xff]  ;;  %v248_v19 = vld [vmem:[%s3201_s6 + $0x38] sm:$0xff] }
  0xac   :  { %2191 = vmatprep.subr.bf16.mxu0 %v2510_v0  ;;  %2196 = vmatpush3.bf16.msra.mxu1 %v2195_v12  ;;  %v2201_v17 = vpack.c.bf16 %v246_v15, %v245_v14  ;;  %v2204_v20 = vpack.c.bf16 %v248_v19, %v247_v18  ;;  %v331_v21 = vld [vmem:[%s3202_s8] sm:$0xff]  ;;  %v332_v22 = vld [vmem:[%s3202_s8 + $0x8] sm:$0xff]  ;;  %v333_v23 = vld [vmem:[%s3202_s8 + $0x10] sm:$0xff] }
  0xad   :  { %2197 = vmatprep.subr.bf16.mxu1 %v2510_v0  ;;  %v2207_v24 = vpack.c.bf16 %v332_v22, %v331_v21  ;;  %v334_v25 = vld [vmem:[%s3202_s8 + $0x18] sm:$0xff]  ;;  %v335_v27 = vld [vmem:[%s3202_s8 + $0x20] sm:$0xff]  ;;  %v336_v28 = vld [vmem:[%s3202_s8 + $0x28] sm:$0xff] }
  0xae   :  { %v2210_v26 = vpack.c.bf16 %v334_v25, %v333_v23  ;;  %v2213_v29 = vpack.c.bf16 %v336_v28, %v335_v27  ;;  %v1841_v30 = vld [vmem:[%s3203_s10] ss:$0 sm:$0xff]  ;;  %v337_v35 = vld [vmem:[%s3202_s8 + $0x30] sm:$0xff]  ;;  %v338_v36 = vld [vmem:[%s3202_s8 + $0x38] sm:$0xff]  ;;  %s3205_s10 = sld [smem:[#allocation32_spill]] }
  0xaf   :  { %2193 = vmatpush3.bf16.msra.mxu0 %v2192_v11  ;;  %v2216_v37 = vpack.c.bf16 %v338_v36, %v337_v35  ;;  %v420_v38 = vld [vmem:[%s3204_s3] sm:$0xff]  ;;  %v421_v39 = vld [vmem:[%s3204_s3 + $0x8] sm:$0xff]  ;;  %v422_v46 = vld [vmem:[%s3204_s3 + $0x10] sm:$0xff] }
  0xb0   :  { %2206 = vmatprep.subr.bf16.mxu0 %v2510_v0  ;;  %2199 = vmatpush3.bf16.msra.mxu1 %v2198_v13  ;;  %v2219_v40 = vpack.c.bf16 %v421_v39, %v420_v38  ;;  %v423_v47 = vld [vmem:[%s3204_s3 + $0x18] sm:$0xff]  ;;  %v589_v2 = vld [vmem:[%s3154_s12 + $0x8] sm:$0xff]  ;;  %v590_v4 = vld [vmem:[%s3154_s12 + $0x10] sm:$0xff] }
  0xb1   :  { %2200 = vmatprep.subr.bf16.mxu1 %v2510_v0  ;;  %v2222_v48 = vpack.c.bf16 %v423_v47, %v422_v46  ;;  %v2228_v3 = vpack.c.bf16 %v589_v2, %v588_v63  ;;  %v591_v5 = vld [vmem:[%s3154_s12 + $0x18] sm:$0xff]  ;;  %v673_v7 = vld [vmem:[%s3156_s14] sm:$0xff]  ;;  %v674_v8 = vld [vmem:[%s3156_s14 + $0x8] sm:$0xff] }
  0xb2   :  { %1979 = vmatmul.mubr.msk.f32.vlgmr.msra.gmra.mrb[0].mxu0 %vm166_vm1, %v2766_v16  ;;  %v2231_v6 = vpack.c.bf16 %v591_v5, %v590_v4  ;;  %v675_v9 = vld [vmem:[%s3156_s14 + $0x10] sm:$0xff]  ;;  %v2234_v10 = vpack.c.bf16 %v674_v8, %v673_v7  ;;  %v676_v11 = vld [vmem:[%s3156_s14 + $0x18] sm:$0xff]  ;;  %v677_v13 = vld [vmem:[%s3156_s14 + $0x20] sm:$0xff] }
  0xb3   :  { %2016 = vmatprep.mubr.msk.f32.mxu0 %vm2511_vm0, %v2512_v1  ;;  %2208 = vmatpush3.bf16.msra.mxu0 %v2207_v24  ;;  %v2237_v12 = vpack.c.bf16 %v676_v11, %v675_v9  ;;  %v678_v14 = vld [vmem:[%s3156_s14 + $0x28] sm:$0xff]  ;;  %v679_v22 = vld [vmem:[%s3156_s14 + $0x30] sm:$0xff]  ;;  %v680_v23 = vld [vmem:[%s3156_s14 + $0x38] sm:$0xff] }
  0xb4   :  { %2202 = vmatpush3.bf16.msra.mxu1 %v2201_v17  ;;  %2209 = vmatprep.subr.bf16.mxu0 %v2510_v0  ;;  %v504_v54 = vld [vmem:[%s3205_s10] sm:$0xff]  ;;  %v505_v55 = vld [vmem:[%s3205_s10 + $0x8] sm:$0xff]  ;;  %v2240_v15 = vpack.c.bf16 %v678_v14, %v677_v13  ;;  %v1849_v17 = vld [vmem:[#allocation11] ss:$0 sm:$0xff]  ;;  %v2243_v24 = vpack.c.bf16 %v680_v23, %v679_v22  ;;  %s2515_s10 = smov [#allocation14]  }
  0xb5   :  { %2203 = vmatprep.subr.bf16.mxu1 %v2510_v0  ;;  %v2225_v56 = vpack.c.bf16 %v505_v55, %v504_v54  ;;  %v762_v25 = vld [vmem:[%s3158_s16] sm:$0xff]  ;;  %v764_v27 = vld [vmem:[%s3158_s16 + $0x10] sm:$0xff]  ;;  %v851_v38 = vld [vmem:[%s3160_s18 + $0x8] sm:$0xff]  ;;  %s1821_s1 = sshll.u32 %s2515_s10, 4  ;;  %s1822_s1 = int_to_ptr.vmem [resolvable:$true] %s1821_s1 }
  0xb6   :  { %v1851_v36 = vld [vmem:[%s3155_s13] ss:$0 sm:$0xff]  ;;  %v852_v46 = vld [vmem:[%s3160_s18 + $0x10] sm:$0xff]  ;;  %v853_v47 = vld [vmem:[%s3160_s18 + $0x18] sm:$0xff] }
  0xb7   :  { %2211 = vmatpush3.bf16.msra.mxu0 %v2210_v26  ;;  %v763_v26 = vld [vmem:[%s3158_s16 + $0x8] sm:$0xff]  ;;  %v1002_v54 = vld [vmem:[%s3161_s19] sm:$0xff]  ;;  %v1005_v4 = vld [vmem:[%s3161_s19 + $0x18] sm:$0xff] }
  0xb8   :  { %2205 = vmatpush3.bf16.msra.mxu1 %v2204_v20  ;;  %2212 = vmatprep.subr.bf16.mxu0 %v2510_v0  ;;  %v2246_v28 = vpack.c.bf16 %v763_v26, %v762_v25  ;;  %v1007_v7 = vld [vmem:[%s3161_s19 + $0x28] sm:$0xff]  ;;  %v1008_v9 = vld [vmem:[%s3161_s19 + $0x30] sm:$0xff]  ;;  %v1157_v23 = vld [vmem:[%s3162_s20] sm:$0xff] }
  0xb9   :  { %2218 = vmatprep.subr.bf16.mxu1 %v2510_v0 }
  0xbb   :  { %2214 = vmatpush3.bf16.msra.mxu0 %v2213_v29  ;;  %v765_v29 = vld [vmem:[%s3158_s16 + $0x18] sm:$0xff] }
  0xbc   :  { %2215 = vmatprep.subr.bf16.mxu0 %v2510_v0 }
  0xbf   :  { %2217 = vmatpush3.bf16.msra.mxu0 %v2216_v37  ;;  %v850_v37 = vld [vmem:[%s3160_s18] sm:$0xff] }
  0xc0   :  { %2224 = vmatprep.subr.bf16.mxu0 %v2510_v0 }
 0x185   :  { %v236_v31 = vpop.f32.mrb[0].mxu0 }
 0x186   :  { %v2806_v32 = vadd.f32 %v1841_v30, %v236_v31  ;;  %v1980_v33 = vpop.f32.mrb[1].mxu0  ;;  %v2249_v30 = vpack.c.bf16 %v765_v29, %v764_v27  ;;  %v766_v31 = vld [vmem:[%s3158_s16 + $0x20] sm:$0xff] }
 0x187   :  { %v767_v33 = vld [vmem:[%s3158_s16 + $0x28] sm:$0xff]  ;;  %v1161_v29 = vld [vmem:[%s3162_s20 + $0x20] sm:$0xff] }
 0x188   :  { %v240_v34 = vmax.f32 %v2806_v32, 0.0  ;;  %v2252_v35 = vpack.c.bf16 %v767_v33, %v766_v31  ;;  %v1159_v32 = vld [vmem:[%s3162_s20 + $0x10] sm:$0xff] }
 0x189   :  { %v1163_v33 = vld [vmem:[%s3162_s20 + $0x30] sm:$0xff] }
 0x18a   :  { %1998 = vmatmul.mubr.msk.f32.vlgmr.msra.gmra.mrb[0].mxu1 %vm256_vm2, %v240_v34 }
 0x18b   :  { %2027 = vmatprep.mubr.msk.f32.mxu1 %vm2511_vm0, %v2512_v1  ;;  %2220 = vmatpush3.bf16.msra.mxu1 %v2219_v40 }
 0x18c   :  { %2221 = vmatprep.subr.bf16.mxu1 %v2510_v0 }
 0x18f   :  { %2223 = vmatpush3.bf16.msra.mxu1 %v2222_v48  ;;  %v2261_v48 = vpack.c.bf16 %v853_v47, %v852_v46 }
 0x190   :  { %2227 = vmatprep.subr.bf16.mxu1 %v2510_v0 }
 0x25d   :  { %v326_v42 = vpop.f32.mrb[0].mxu1 }
 0x25e   :  { %v2828_v43 = vadd.f32 %v1843_v41, %v326_v42  ;;  %v1999_v44 = vpop.f32.mrb[1].mxu1  ;;  %v2258_v42 = vpack.c.bf16 %v851_v38, %v850_v37 }
 0x260   :  { %v330_v45 = vmax.f32 %v2828_v43, 0.0  ;;  %v1312_v43 = vld [vmem:[%s3163_s21] sm:$0xff] }
 0x262   :  { %2017 = vmatmul.mubr.msk.f32.vlgmr.msra.gmra.mrb[2].mxu0 %vm256_vm2, %v330_v45 }
 0x263   :  { %2034 = vmatprep.mubr.msk.f32.mxu0 %vm2511_vm0, %v2512_v1  ;;  %2226 = vmatpush3.bf16.msra.mxu0 %v2225_v56  ;;  %v1853_v56 = vld [vmem:[%s3157_s15] ss:$0 sm:$0xff] }
 0x264   :  { %2233 = vmatprep.subr.bf16.mxu0 %v2510_v0 }
 0x335   :  { %v415_v50 = vpop.f32.mrb[2].mxu0 }
 0x336   :  { %v2843_v51 = vadd.f32 %v1845_v49, %v415_v50  ;;  %v2018_v52 = vpop.f32.mrb[3].mxu0  ;;  %v768_v49 = vld [vmem:[%s3158_s16 + $0x30] sm:$0xff]  ;;  %v769_v50 = vld [vmem:[%s3158_s16 + $0x38] sm:$0xff] }
 0x337   :  { %v2255_v52 = vpack.c.bf16 %v769_v50, %v768_v49  ;;  %v1315_v49 = vld [vmem:[%s3163_s21 + $0x18] sm:$0xff] }
 0x338   :  { %v419_v53 = vmax.f32 %v2843_v51, 0.0 }
 0x33a   :  { %2028 = vmatmul.mubr.msk.f32.vlgmr.msra.gmra.mrb[2].mxu1 %vm166_vm1, %v419_v53 }
 0x33b   :  { %2045 = vmatprep.mubr.msk.f32.mxu1 %vm2511_vm0, %v2512_v1  ;;  %2229 = vmatpush3.bf16.msra.mxu1 %v2228_v3  ;;  %v1004_v3 = vld [vmem:[%s3161_s19 + $0x10] sm:$0xff] }
 0x33c   :  { %2230 = vmatprep.subr.bf16.mxu1 %v2510_v0  ;;  %v2267_v5 = vpack.c.bf16 %v1005_v4, %v1004_v3  ;;  %v1623_v4 = vld [vmem:[%s3165_s23] sm:$0xf]  ;;  %s2514_s23 = smov [#allocation13]  }
 0x33d   :  { %s1807_s0 = sshll.u32 %s2514_s23, 4  ;;  %s1808_s0 = int_to_ptr.vmem [resolvable:$true] %s1807_s0 }
 0x33e   :  { %s2448_s14 = scalar_lea.vmem %s1808_s0, 128  ;;  %p2453_p7 = scmp.lt.s32.totalorder %s1808_s0, %s1808_s0 }
 0x33f   :  { %2232 = vmatpush3.bf16.msra.mxu1 %v2231_v6  ;;  %v1006_v6 = vld [vmem:[%s3161_s19 + $0x20] sm:$0xff]  ;;  %p2449_p6 = scmp.ne.s32.totalorder %s1808_s0, %s2448_s14  ;;  %p2454_p8 = scmp.lt.s32.totalorder %s2448_s14, %s2448_s14 }
 0x340   :  { %2245 = vmatprep.subr.bf16.mxu1 %v2510_v0  ;;  %v2270_v8 = vpack.c.bf16 %v1007_v7, %v1006_v6  ;;  %v1628_v7 = vmul.f32 %v1623_v4, %v1623_v4 }
 0x341   :  { %p2455_p9 = por %p2454_p8, %p2453_p7 }
 0x343   :  { %p2456_p10 = pnand %p2455_p9, %p2449_p6 }
 0x40d   :  { %v500_v58 = vpop.f32.mrb[2].mxu1 }
 0x40e   :  { %v2858_v59 = vadd.f32 %v1847_v57, %v500_v58  ;;  %v2029_v60 = vpop.f32.mrb[3].mxu1 }
 0x410   :  { %2035 = vmatmul.mubr.msk.f32.vlgmr.msra.gmra.mrb[4].mxu0 %vm513_vm3, %v2858_v59  ;;  %1800 = vst.msk [vmem:[#allocation14] sm:$0xff] %vm513_vm3, %v2858_v59  ;;  %v1624_v61 = vmul.f32 %v2858_v59, %v2858_v59  ;;  %v1461_v6 = vmul.f32 0.5, %v2858_v59 }
 0x411   :  { %2064 = vmatprep.mubr.msk.f32.mxu0 %vm2511_vm0, %v2512_v1  ;;  %2235 = vmatpush3.bf16.msra.mxu0 %v2234_v10  ;;  %v1009_v10 = vld [vmem:[%s3161_s19 + $0x38] sm:$0xff] }
 0x412   :  { %v1625_v62 = vsel %vm513_vm3, %v1624_v61, 0.0  ;;  %2236 = vmatprep.subr.bf16.mxu0 %v2510_v0  ;;  %v2273_v11 = vpack.c.bf16 %v1009_v10, %v1008_v9 }
 0x413   :  { %1626 = vadd.xlane.f32.xlu0 %v1625_v62  ;;  %v2979_v62 = vld [vmem:[#allocation5] sm:$0xff] }
 0x415   :  { %2238 = vmatpush3.bf16.msra.mxu0 %v2237_v12  ;;  %v1855_v12 = vld [vmem:[%s3159_s17] ss:$0 sm:$0xff] }
 0x416   :  { %2239 = vmatprep.subr.bf16.mxu0 %v2510_v0 }
 0x419   :  { %2241 = vmatpush3.bf16.msra.mxu0 %v2240_v15 }
 0x41a   :  { %2242 = vmatprep.subr.bf16.mxu0 %v2510_v0 }
 0x41d   :  { %2244 = vmatpush3.bf16.msra.mxu0 %v2243_v24  ;;  %v1158_v24 = vld [vmem:[%s3162_s20 + $0x8] sm:$0xff] }
 0x41e   :  { %2257 = vmatprep.subr.bf16.mxu0 %v2510_v0  ;;  %v2276_v25 = vpack.c.bf16 %v1158_v24, %v1157_v23 }
 0x4e3   :  { %v583_v18 = vpop.f32.mrb[4].mxu0 }
 0x4e4   :  { %v584_v19 = vadd.f32 %v1849_v17, %v583_v18  ;;  %v2036_v20 = vpop.f32.mrb[5].mxu0 }
 0x4e5   :  { %v1000_v20 = vmul.f32 0.5, %v240_v34  ;;  %v1160_v34 = vld [vmem:[%s3162_s20 + $0x18] sm:$0xff] }
 0x4e6   :  { %v587_v21 = vmax.f32 %v584_v19, 0.0 }
 0x4e8   :  { %2046 = vmatmul.mubr.msk.f32.vlgmr.msra.gmra.mrb[4].mxu1 %vm166_vm1, %v587_v21 }
 0x4e9   :  { %2083 = vmatprep.mubr.msk.f32.mxu1 %vm2511_vm0, %v2512_v1  ;;  %2247 = vmatpush3.bf16.msra.mxu1 %v2246_v28  ;;  %v2279_v28 = vpack.c.bf16 %v1160_v34, %v1159_v32 }
 0x4ea   :  { %2248 = vmatprep.subr.bf16.mxu1 %v2510_v0 }
 0x4ed   :  { %2250 = vmatpush3.bf16.msra.mxu1 %v2249_v30  ;;  %v1162_v30 = vld [vmem:[%s3162_s20 + $0x28] sm:$0xff] }
 0x4ee   :  { %2251 = vmatprep.subr.bf16.mxu1 %v2510_v0  ;;  %v2282_v31 = vpack.c.bf16 %v1162_v30, %v1161_v29 }
 0x4f1   :  { %2253 = vmatpush3.bf16.msra.mxu1 %v2252_v35  ;;  %v1164_v35 = vld [vmem:[%s3162_s20 + $0x38] sm:$0xff] }
 0x4f2   :  { %2254 = vmatprep.subr.bf16.mxu1 %v2510_v0 }
 0x4f5   :  { %2256 = vmatpush3.bf16.msra.mxu1 %v2255_v52 }
 0x4f6   :  { %2097 = vmatprep.subr.mxu1 %v2512_v1 }
 0x5bb   :  { %v668_v39 = vpop.f32.mrb[4].mxu1 }
 0x5bc   :  { %v669_v40 = vadd.f32 %v1851_v36, %v668_v39  ;;  %v2047_v41 = vpop.f32.mrb[5].mxu1  ;;  %v2285_v36 = vpack.c.bf16 %v1164_v35, %v1163_v33 }
 0x5be   :  { %v672_v44 = vmax.f32 %v669_v40, 0.0  ;;  %v1155_v40 = vmul.f32 0.5, %v330_v45  ;;  %v1313_v45 = vld [vmem:[%s3163_s21 + $0x8] sm:$0xff] }
 0x5bf   :  { %v2288_v47 = vpack.c.bf16 %v1313_v45, %v1312_v43 }
 0x5c0   :  { %2065 = vmatmul.mubr.msk.f32.vlgmr.msra.gmra.mrb[6].mxu0 %vm256_vm2, %v672_v44 }
 0x5c1   :  { %2259 = vmatpush3.bf16.msra.mxu0 %v2258_v42  ;;  %2094 = vmatprep.mubr.msk.f32.mxu0 %vm2511_vm0, %v2512_v1 }
 0x5c2   :  { %2260 = vmatprep.subr.bf16.mxu0 %v2510_v0 }
 0x5c5   :  { %2262 = vmatpush3.bf16.msra.mxu0 %v2261_v48  ;;  %v1314_v48 = vld [vmem:[%s3163_s21 + $0x10] sm:$0xff] }
 0x5c6   :  { %2263 = vmatprep.subr.bf16.mxu0 %v2510_v0  ;;  %v2291_v50 = vpack.c.bf16 %v1315_v49, %v1314_v48 }
 0x5c8   :  { %2095 = vmatmul.mubr.msk.f32.vlgmr.msra.gmra.mrb[8].mxu0 %vm166_vm1, %v2766_v16  ;;  %v1003_v16 = vld [vmem:[%s3161_s19 + $0x8] sm:$0xff] }
 0x5c9   :  { %2118 = vmatprep.mubr.msk.f32.mxu0 %vm2511_vm0, %v2512_v1  ;;  %v2264_v55 = vpack.c.bf16 %v1003_v16, %v1002_v54 }
 0x5cb   :  { %2265 = vmatpush3.bf16.msra.mxu0 %v2264_v55  ;;  %v1310_v55 = vmul.f32 0.5, %v419_v53 }
 0x5cc   :  { %2266 = vmatprep.subr.bf16.mxu0 %v2510_v0 }
 0x5cf   :  { %2268 = vmatpush3.bf16.msra.mxu0 %v2267_v5 }
 0x5d0   :  { %2269 = vmatprep.subr.bf16.mxu0 %v2510_v0 }
 0x5d3   :  { %2271 = vmatpush3.bf16.msra.mxu0 %v2270_v8 }
 0x5d4   :  { %2272 = vmatprep.subr.bf16.mxu0 %v2510_v0 }
 0x5d7   :  { %2274 = vmatpush3.bf16.msra.mxu0 %v2273_v11 }
 0x5d8   :  { %2145 = vmatprep.subr.mxu0 %v2512_v1 }
 0x693   :  { %v757_v57 = vpop.f32.mrb[6].mxu0 }
 0x694   :  { %v758_v58 = vadd.f32 %v1853_v56, %v757_v57  ;;  %v2066_v60 = vpop.f32.mrb[7].mxu0 }
 0x695   :  { %v1464_v60 = vld [vmem:[%s3164_s22 + $0x8] sm:$0xff] }
 0x696   :  { %v761_v61 = vmax.f32 %v758_v58, 0.0  ;;  %v1463_v58 = vld [vmem:[%s3164_s22] sm:$0xff] }
 0x698   :  { %2084 = vmatmul.mubr.msk.f32.vlgmr.msra.gmra.mrb[6].mxu1 %vm256_vm2, %v761_v61  ;;  %v2294_v61 = vpack.c.bf16 %v1464_v60, %v1463_v58 }
 0x699   :  { %2099 = vmatprep.mubr.msk.f32.mxu1 %vm2511_vm0, %v2512_v1 }
 0x69b   :  { %v920_v63 = vpop.f32.mrb[8].mxu0 }
 0x69c   :  { %v2096_v2 = vpop.f32.mrb[9].mxu0  ;;  %2098 = vmatpush3.msra.mxu1 %v920_v63 }
 0x69d   :  { %2100 = vmatmul.mubr.msk.f32.vlgmr.msra.gmra.mrb[8].mxu1 %vm924_vm4, %v2979_v62  ;;  %2121 = vmatprep.subr.mxu1 %v2512_v1 }
 0x69e   :  { %2123 = vmatprep.mubr.msk.f32.mxu1 %vm2511_vm0, %v2512_v1 }
 0x76b   :  { %v846_v13 = vpop.f32.mrb[6].mxu1 }
 0x76c   :  { %v847_v14 = vadd.f32 %v1855_v12, %v846_v13  ;;  %v2085_v15 = vpop.f32.mrb[7].mxu1  ;;  %v1778_v13 = vlaneseq }
 0x76e   :  { %1797 = vst.msk [vmem:[#allocation13] sm:$0xff] %vm166_vm1, %v847_v14  ;;  %v1779_v14 = vshrl.u32 %v1778_v13, 7 }
 0x770   :  { %v994_v17 = vpop.f32.mrb[8].mxu1 }
 0x771   :  { %v998_v18 = vmax.f32 %v994_v17, 0.0  ;;  %v2101_v19 = vpop.f32.mrb[9].mxu1 }
 0x773   :  { %v999_v21 = vmul.f32 0.5, %v998_v18 }
 0x775   :  { %v1001_v22 = vadd.f32 %v1000_v20, %v999_v21  ;;  %v1627_v20 = vpop.xlane.xlu0 %1626 }
 0x777   :  { %2119 = vmatmul.mubr.msk.f32.vlgmr.msra.gmra.mrb[10].mxu0 %vm256_vm2, %v1001_v22 }
 0x778   :  { %2147 = vmatprep.mubr.msk.f32.mxu0 %vm2511_vm0, %v2512_v1 }
 0x84a   :  { %v1079_v26 = vpop.f32.mrb[10].mxu0 }
 0x84b   :  { %v2120_v27 = vpop.f32.mrb[11].mxu0  ;;  %2122 = vmatpush3.msra.mxu1 %v1079_v26 }
 0x84c   :  { %2124 = vmatmul.mubr.msk.f32.vlgmr.msra.gmra.mrb[10].mxu1 %vm924_vm4, %v2979_v62  ;;  %2275 = vmatprep.subr.bf16.mxu1 %v2510_v0 }
 0x84d   :  { %2277 = vmatpush3.bf16.msra.mxu1 %v2276_v25  ;;  %2142 = vmatprep.mubr.msk.f32.mxu1 %vm2511_vm0, %v2512_v1 }
 0x84e   :  { %2278 = vmatprep.subr.bf16.mxu1 %v2510_v0 }
 0x851   :  { %2280 = vmatpush3.bf16.msra.mxu1 %v2279_v28 }
 0x852   :  { %2281 = vmatprep.subr.bf16.mxu1 %v2510_v0 }
 0x855   :  { %2283 = vmatpush3.bf16.msra.mxu1 %v2282_v31 }
 0x856   :  { %2284 = vmatprep.subr.bf16.mxu1 %v2510_v0 }
 0x859   :  { %2286 = vmatpush3.bf16.msra.mxu1 %v2285_v36 }
 0x85a   :  { %2161 = vmatprep.subr.mxu1 %v2512_v1 }
 0x91f   :  { %v1149_v37 = vpop.f32.mrb[10].mxu1 }
 0x920   :  { %v1153_v38 = vmax.f32 %v1149_v37, 0.0  ;;  %v2125_v39 = vpop.f32.mrb[11].mxu1 }
 0x922   :  { %v1154_v41 = vmul.f32 0.5, %v1153_v38 }
 0x924   :  { %v1156_v42 = vadd.f32 %v1155_v40, %v1154_v41 }
 0x926   :  { %2143 = vmatmul.mubr.msk.f32.vlgmr.msra.gmra.mrb[12].mxu1 %vm256_vm2, %v1156_v42 }
 0x927   :  { %2163 = vmatprep.mubr.msk.f32.mxu1 %vm2511_vm0, %v2512_v1 }
 0x9f9   :  { %v1234_v44 = vpop.f32.mrb[12].mxu1 }
 0x9fa   :  { %v2144_v46 = vpop.f32.mrb[13].mxu1  ;;  %2146 = vmatpush3.msra.mxu0 %v1234_v44 }
 0x9fb   :  { %2148 = vmatmul.mubr.msk.f32.vlgmr.msra.gmra.mrb[12].mxu0 %vm924_vm4, %v2979_v62  ;;  %2287 = vmatprep.subr.bf16.mxu0 %v2510_v0 }
 0x9fc   :  { %2158 = vmatprep.mubr.msk.f32.mxu0 %vm2511_vm0, %v2512_v1  ;;  %2289 = vmatpush3.bf16.msra.mxu0 %v2288_v47 }
 0x9fd   :  { %2290 = vmatprep.subr.bf16.mxu0 %v2510_v0 }
 0xa00   :  { %2292 = vmatpush3.bf16.msra.mxu0 %v2291_v50 }
 0xa01   :  { %2173 = vmatprep.subr.mxu0 %v2512_v1 }
 0xace   :  { %v1304_v52 = vpop.f32.mrb[12].mxu0 }
 0xacf   :  { %v1308_v54 = vmax.f32 %v1304_v52, 0.0  ;;  %v2149_v16 = vpop.f32.mrb[13].mxu0 }
 0xad1   :  { %v1309_v56 = vmul.f32 0.5, %v1308_v54 }
 0xad3   :  { %v1311_v57 = vadd.f32 %v1310_v55, %v1309_v56 }
 0xad5   :  { %2159 = vmatmul.mubr.msk.f32.vlgmr.msra.gmra.mrb[14].mxu0 %vm166_vm1, %v1311_v57 }
 0xad6   :  { %2175 = vmatprep.mubr.msk.f32.mxu0 %vm2511_vm0, %v2512_v1 }
 0xba8   :  { %v1385_v63 = vpop.f32.mrb[14].mxu0 }
 0xba9   :  { %v2160_v2 = vpop.f32.mrb[15].mxu0  ;;  %2162 = vmatpush3.msra.mxu1 %v1385_v63 }
 0xbaa   :  { %2164 = vmatmul.mubr.msk.f32.vlgmr.msra.gmra.mrb[14].mxu1 %vm924_vm4, %v2979_v62  ;;  %2293 = vmatprep.subr.bf16.mxu1 %v2510_v0  ;;  %v2513_v0 = vmov 1.0  }
 0xbab   :  { %2295 = vmatpush3.bf16.msra.mxu1 %v2294_v61  ;;  %2170 = vmatprep.mubr.msk.f32.mxu1 %vm2511_vm0, %v2512_v1 }
 0xbac   :  { %2178 = vmatprep.subr.mxu1 %v2512_v1 }
 0xc7d   :  { %v1455_v51 = vpop.f32.mrb[14].mxu1 }
 0xc7e   :  { %v1459_v53 = vmax.f32 %v1455_v51, 0.0  ;;  %v2165_v3 = vpop.f32.mrb[15].mxu1 }
 0xc80   :  { %v1460_v5 = vmul.f32 0.5, %v1459_v53 }
 0xc82   :  { %v1462_v8 = vadd.f32 %v1461_v6, %v1460_v5 }
 0xc84   :  { %2171 = vmatmul.mubr.msk.f32.vlgmr.msra.gmra.mrb[16].mxu1 %vm513_vm3, %v1462_v8 }
 0xc85   :  { %2179 = vmatpush3.xpose.msk.msra.mxu1 %vm513_vm3, %v1628_v7  ;;  %2180 = vmatprep.mubr.msk.f32.mxu1 %vm2511_vm0, %v2512_v1 }
 0xc88   :  { %2181 = vmatmul.mubr.msk.f32.vlgmr.msra.gmra.mrb[18].mxu1 %vm513_vm3, %v2513_v0 }
 0xd57   :  { %v1534_v9 = vpop.f32.mrb[16].mxu1 }
 0xd58   :  { %v2172_v10 = vpop.f32.mrb[17].mxu1  ;;  %2174 = vmatpush3.msra.mxu0 %v1534_v9 }
 0xd59   :  { %2176 = vmatmul.mubr.msk.f32.vlgmr.msra.gmra.mrb[16].mxu0 %vm924_vm4, %v2979_v62  ;;  %2183 = vmatprep.subr.mxu0 %v2512_v1  ;;  %v1780_v62 = vsub.s32 0, %v1779_v14 }
 0xd5a   :  { %2185 = vmatprep.mubr.msk.f32.mxu0 %vm2511_vm0, %v2512_v1 }
 0xd5b   :  { %v1701_v11 = vpop.f32.mrb[18].mxu1 }
 0xd5c   :  { %v2182_v12 = vpop.f32.mrb[19].mxu1  ;;  %v1781_v19 = vrot.slane %v1701_v11, %v1780_v62 }
 0xd5e   :  { %v1782_v1 = vadd.f32 %v1781_v19, %v1627_v20 }
 0xd5f   :  { %2184 = vmatpush3.xpose.msk.msra.mxu0 %vm513_vm3, %v1623_v4 }
 0xd62   :  { %2186 = vmatmul.mubr.msk.f32.vlgmr.msra.gmra.mrb[18].mxu0 %vm513_vm3, %v2858_v59 }
 0xe2c   :  { %v1604_v15 = vpop.f32.mrb[16].mxu0 }
 0xe2d   :  { %v1609_v17 = vsel %vm1608_vm5, %v1604_v15, -inf  ;;  %v2177_v18 = vpop.f32.mrb[17].mxu0 }
 0xe2e   :  { %1610 = vmax.xlane.f32.xlu0 %v1609_v17 }
 0xe35   :  { %v1774_v21 = vpop.f32.mrb[18].mxu0 }
 0xe36   :  { %v1783_v22 = vmul.f32 2.0, %v1774_v21  ;;  %v2187_v23 = vpop.f32.mrb[19].mxu0 }
 0xe38   :  { %v1784_v24 = vsub.f32 %v1782_v1, %v1783_v22 }
 0xe3a   :  { %v1785_v25 = vmax.f32 %v1784_v24, 0.0 }
 0xe3c   :  { %v1786_v59 = vadd.f32 1.0, %v1785_v25 }
 0xebb   :  { %v1611_v26 = vpop.xlane.xlu0 %1610 }
 0xebc   :  { %v1612_v32 = vsub.f32 %v1604_v15, %v1611_v26 }
 0xebe   :  { %v1613_v34 = vmul.f32 1.442695, %v1612_v32 }
 0xec0   :  { %2308 = vpow2.f32 %v1613_v34 }
 0xec1   :  { %2310 = vrcp.f32 %v1786_v59 }
 0xeca   :  { %v2309_v27 = vpop.eup %2308 }
 0xecb   :  { %v1615_v28 = vsel %vm1608_vm5, %v2309_v27, 0.0  ;;  %v2311_v29 = vpop.eup %2310 }
 0xecc   :  { %1616 = vadd.xlane.f32.xlu1 %v1615_v28  ;;  %v1789_v30 = vsel %vm1608_vm5, %v2311_v29, 0.0 }
 0xed0   :  { %1790 = vadd.xlane.f32.xlu1 %v1789_v30 }
 0xed1   :  { %2459 = shalt.err (!%p2456_p10)
}
 0xed2   :  { %s2460_s9 = scalar_lea.hbm %s3166_s24, 128 }
 0xed3   :  { %p2461_p11 = scmp.ne.s32.totalorder %s3166_s24, %s2460_s9  ;;  %p2464_p12 = scmp.lt.u32.totalorder %s2460_s9, %s3166_s24 }
 0xed5   :  { %p2466_p13 = pnand %p2464_p12, %p2461_p11 }
 0xed7   :  { %2469 = shalt.err (!%p2466_p13)
}
 0xed8   :  { %1810 = dma.vmem_to_hbm [thread:$0]  %s1808_s0, 128, %s3166_s24, [#allocation4]  }
 0xed9   :  { %s2470_s20 = scalar_lea.vmem %s1822_s1, 128  ;;  %p2475_p1 = scmp.lt.s32.totalorder %s1822_s1, %s1822_s1 }
 0xeda   :  { %p2471_p0 = scmp.ne.s32.totalorder %s1822_s1, %s2470_s20  ;;  %p2476_p2 = scmp.lt.s32.totalorder %s2470_s20, %s2470_s20 }
 0xedc   :  { %p2477_p3 = por %p2476_p2, %p2475_p1 }
 0xede   :  { %p2478_p4 = pnand %p2477_p3, %p2471_p0 }
 0xee0   :  { %2481 = shalt.err (!%p2478_p4)
}
 0xee1   :  { %s2482_s8 = scalar_lea.hbm %s3169_s27, 128 }
 0xee2   :  { %p2483_p5 = scmp.ne.s32.totalorder %s3169_s27, %s2482_s8  ;;  %p2486_p6 = scmp.lt.u32.totalorder %s2482_s8, %s3169_s27 }
 0xee4   :  { %p2488_p7 = pnand %p2486_p6, %p2483_p5 }
 0xee6   :  { %2491 = shalt.err (!%p2488_p7)
}
 0xee7   :  { %1824 = dma.vmem_to_hbm [thread:$0]  %s1822_s1, 128, %s3169_s27, [#allocation15]  }
 0xee8   :  { %s3206_s7 = sld [smem:[#allocation34_spill]] }
 0xf59   :  { %v1617_v31 = vpop.xlane.xlu1 %1616 }
 0xf5a   :  { %2312 = vrcp.f32 %v1617_v31 }
 0xf5d   :  { %v1791_v33 = vpop.xlane.xlu1 %1790 }
 0xf5e   :  { %2314 = vrcp.f32 %v1791_v33 }
 0xf64   :  { %v2313_v35 = vpop.eup %2312 }
 0xf65   :  { %v1619_v36 = vmul.f32 %v2313_v35, %v1617_v31 }
 0xf67   :  { %v1620_v37 = vsub.f32 2.0, %v1619_v36 }
 0xf68   :  { %v2315_v38 = vpop.eup %2314 }
 0xf69   :  { %v1621_v39 = vmul.f32 %v2313_v35, %v1620_v37  ;;  %v1793_v40 = vmul.f32 %v2315_v38, %v1791_v33 }
 0xf6b   :  { %v1622_v41 = vmul.f32 %v2309_v27, %v1621_v39  ;;  %v1794_v42 = vsub.f32 2.0, %v1793_v40 }
 0xf6d   :  { %1799 = vst.msk [vmem:[%s3168_s26] sm:$0xff] %vm1608_vm5, %v1622_v41  ;;  %v1795_v44 = vmul.f32 %v2315_v38, %v1794_v42 }
 0xf6f   :  { %v1796_v46 = vmul.f32 %v2311_v29, %v1795_v44 }
 0xf71   :  { %1798 = vst.msk [vmem:[%s3206_s7] sm:$0xff] %vm1608_vm5, %v1796_v46 }
 0xf72   :  { %2500 = dma.done.wait [#allocation4], 128  }
 0xf73   :  { %2501 = vsyncadd [#allocation4], 4294967168 }
 0xf74   :  { %2502 = dma.done.wait [#allocation15], 128  }
 0xf75   :  { %2503 = vsyncadd [#allocation15], 4294967168 }
 0xf76   :  { %1835 = vsyncpa [#allocation3], 1 }
 0xf77   :  { %1836 = vsyncpa [#allocation6], 1 }
 0xf78   :  { %1837 = vsyncpa [#allocation9], 1 }
 0xf79   :  { %1838 = vsyncpa [#allocation12], 1 }
 0xf7a   :  { %1839 = vsyncpa [#allocation4], 1 }
 0xf7b   :  { %1840 = vsyncpa [#allocation15], 1 }

</bundles_post_ra>
